<compile_context>
chip_gen: v6e
topology: v6e:2x2x1
jax: 0.10.0
libtpu: 0.0.40
codegen_flags: <defaults>
</compile_context>

<pallas_src>
import functools

import jax
import jax.numpy as jnp
from jax.experimental import pallas as pl
from jax.experimental.pallas import tpu as pltpu


def _round_up(x, m):
    return ((x + m - 1) // m) * m


# ---------------------------------------------------------------------------
# Index maps (batch axis is tiled; everything else is replicated/full)
# ---------------------------------------------------------------------------
def _x_map(i):        # x_t (d, Bp): batch tiled along axis 1
    return (0, i)


def _u_map(i):        # u (k, d, Bp): batch tiled along axis 2
    return (0, 0, i)


def _out_map(i):      # out_t (out_dim, Bp): batch tiled along axis 1
    return (0, i)


def _rep(i):          # replicated (full-block) parameters
    return (0, 0)


# ---------------------------------------------------------------------------
# Fused kernel: feature-major (batch-on-lanes) layout
# ---------------------------------------------------------------------------
def _l2x_kernel(x_ref, u_ref, w1_ref, b1_ref, w2_ref, b2_ref,
                w3_ref, b3_ref, w4_ref, b4_ref, out_ref,
                *, tau, k, approx_recip):
    """One (d, TB) batch tile, everything transposed (features on sublanes,
    batch on lanes):

      selection_model : w1_t@x_t + b1 -> ReLU -> w2_t@. + b2      -> logits_t
      SamplingLayer   : weights = max_j softmax_d((gumbel_j + logits)/tau)
      prediction_model: w3_t@(x*weights)_t + b3 -> ReLU -> w4_t@. + b4
    """
    x_t = x_ref[...]                                   # (d, TB) compute dtype
    x32 = x_t.astype(jnp.float32)

    # ---- selection model ----
    h1 = jnp.dot(w1_ref[...], x_t,
                 preferred_element_type=jnp.float32) + b1_ref[...]
    h1 = jnp.maximum(h1, 0.0).astype(w2_ref.dtype)     # (h, TB)
    logits_t = jnp.dot(w2_ref[...], h1,
                       preferred_element_type=jnp.float32) + b2_ref[...]

    # ---- SamplingLayer: gumbel-softmax over the feature (sublane) axis,
    # running max over the k samples (one (d, TB) sample live at a time). ----
    inv_tau = 1.0 / tau
    lt = logits_t * inv_tau                            # 1/tau folded once
    w_acc = jnp.zeros(lt.shape, jnp.float32)
    for kk in range(k):                                # k is small and static
        u = jnp.clip(u_ref[kk].astype(jnp.float32), 0.0001, 0.9999)
        noisy = (-jnp.log(-jnp.log(u))) * inv_tau + lt   # (d, TB)
        m = jnp.max(noisy, axis=0, keepdims=True)
        e = jnp.exp(noisy - m)
        den = jnp.sum(e, axis=0, keepdims=True)          # (1, TB)
        sm = e * pl.reciprocal(den, approx=approx_recip)
        w_acc = jnp.maximum(w_acc, sm)
    # (postprocess is identity for the default tabular selection model)

    # ---- prediction model on x * weights ----
    xw = (x32 * w_acc).astype(w3_ref.dtype)            # (d, TB)
    h2 = jnp.dot(w3_ref[...], xw,
                 preferred_element_type=jnp.float32) + b3_ref[...]
    h2 = jnp.maximum(h2, 0.0).astype(w4_ref.dtype)     # (h, TB)
    out = jnp.dot(w4_ref[...], h2,
                  preferred_element_type=jnp.float32) + b4_ref[...]
    out_ref[...] = out.astype(out_ref.dtype)           # (out_dim, TB)


# ---------------------------------------------------------------------------
# Wrappers
# ---------------------------------------------------------------------------
def _prep(x, params, *, tb, use_bf16):
    """Pad/transpose inputs & params into the feature-major kernel layout."""
    B, d = x.shape
    h = params["w1"].shape[1]
    out_dim = params["w4"].shape[1]

    # Batch tile: multiple of 128 (batch is the lane axis), capped so the grid
    # has >= 2 steps whenever B allows it (pipelining / both TCs on v7x).
    cap = max(128, -(-B // 2))
    tb = _round_up(min(tb, cap), 128)
    n_tiles = int(pl.cdiv(B, tb))
    Bp = n_tiles * tb                                  # zero-padded batch

    cdtype = jnp.bfloat16 if use_bf16 else jnp.float32
    x_t = jnp.pad(x.T, ((0, 0), (0, Bp - B))).astype(cdtype)   # (d, Bp)

    # TODO(synk): the 8 tiny replicated operands could be packed into one slab
    # (or single-buffered) to trim DMA descriptors; kept separate for clarity.
    w = (
        params["w1"].T.astype(cdtype),        # (h, d)
        params["b1"].T.astype(jnp.float32),   # (h, 1)
        params["w2"].T.astype(cdtype),        # (d, h)
        params["b2"].T.astype(jnp.float32),   # (d, 1)
        params["w3"].T.astype(cdtype),        # (h, d)
        params["b3"].T.astype(jnp.float32),   # (h, 1)
        params["w4"].T.astype(cdtype),        # (out_dim, h)
        params["b4"].T.astype(jnp.float32),   # (out_dim, 1)
    )
    return x_t, w, d, h, out_dim, tb, n_tiles, Bp


def _call(x_t, u_kdb, w, d, h, out_dim, tb, n_tiles, Bp,
          *, tau, k, approx_recip):
    kernel = functools.partial(_l2x_kernel, tau=float(tau), k=int(k),
                               approx_recip=approx_recip)

    in_specs = [
        pl.BlockSpec((d, tb), _x_map),                 # x_t
        pl.BlockSpec((k, d, tb), _u_map),              # uniform noise
    ] + [pl.BlockSpec(a.shape, _rep) for a in w]       # replicated params

    flops = 2 * Bp * (3 * d * h + h * out_dim)
    transcendentals = 3 * Bp * k * d                   # 2 logs + 1 exp / elem
    bytes_accessed = (x_t.nbytes + u_kdb.nbytes
                      + sum(a.nbytes for a in w) + Bp * out_dim * 4)

    out_t = pl.pallas_call(
        kernel,
        out_shape=jax.ShapeDtypeStruct((out_dim, Bp), jnp.float32),
        grid_spec=pltpu.PrefetchScalarGridSpec(
            num_scalar_prefetch=0,
            grid=(n_tiles,),
            in_specs=in_specs,
            out_specs=pl.BlockSpec((out_dim, tb), _out_map),
        ),
        compiler_params=pltpu.CompilerParams(
            dimension_semantics=("parallel",)),
        cost_estimate=pl.CostEstimate(flops=flops,
                                      transcendentals=transcendentals,
                                      bytes_accessed=int(bytes_accessed)),
    )(x_t, u_kdb, *w)
    return out_t                                        # (out_dim, Bp)


def l2x_forward(x, params, *, tau, k, key, tb=1024, use_bf16=False,
                approx_recip=False):
    """L2X forward; fresh uniform noise drawn from `key` (main path)."""
    B = x.shape[0]
    x_t, w, d, h, out_dim, tb, n_tiles, Bp = _prep(
        x, params, tb=tb, use_bf16=use_bf16)
    # iid uniform noise generated directly in the lane-dense (k, d, Bp) layout.
    u = jax.random.uniform(key, (k, d, Bp), dtype=jnp.float32)
    out_t = _call(x_t, u, w, d, h, out_dim, tb, n_tiles, Bp,
                  tau=tau, k=k, approx_recip=approx_recip)
    return out_t[:, :B].T                               # (B, out_dim)


def l2x_forward_with_noise(x, uniform, params, *, tau, tb=1024,
                           use_bf16=False, approx_recip=False):
    """L2X forward with externally supplied uniform noise of PyTorch layout
    (B, k, d) -- used for exact validation against the reference."""
    B = x.shape[0]
    k = uniform.shape[1]
    x_t, w, d, h, out_dim, tb, n_tiles, Bp = _prep(
        x, params, tb=tb, use_bf16=use_bf16)
    u = jnp.transpose(uniform, (1, 2, 0)).astype(jnp.float32)   # (k, d, B)
    u = jnp.pad(u, ((0, 0), (0, 0), (0, Bp - B)), constant_values=0.5)
    out_t = _call(x_t, u, w, d, h, out_dim, tb, n_tiles, Bp,
                  tau=tau, k=k, approx_recip=approx_recip)
    return out_t[:, :B].T                               # (B, out_dim)


# ---------------------------------------------------------------------------
# Pure-JAX reference mirroring the PyTorch semantics
# ---------------------------------------------------------------------------
def l2x_reference(x, uniform, params, *, tau):
    h1 = jnp.maximum(x @ params["w1"] + params["b1"], 0.0)
    logits = h1 @ params["w2"] + params["b2"]                       # (B, d)
    u = jnp.clip(uniform, 0.0001, 0.9999)
    gumbel = -jnp.log(-jnp.log(u))                                  # (B, k, d)
    noisy = (gumbel + logits[:, None, :]) / tau
    weights = jnp.max(jax.nn.softmax(noisy, axis=-1), axis=1)       # (B, d)
    xw = x * weights
    h2 = jnp.maximum(xw @ params["w3"] + params["b3"], 0.0)
    return h2 @ params["w4"] + params["b4"]


if __name__ == "__main__":
    # Small tabular shapes; B=200 -> TB=128, a 2-step grid and batch padding.
    B, D, H, K, OUT = 200, 16, 32, 4, 2
    TAU = 0.5

    key = jax.random.PRNGKey(0)
    kx, ku, k1, k2, k3, k4, kn = jax.random.split(key, 7)

    x = jax.random.normal(kx, (B, D), dtype=jnp.float32)
    uniform = jax.random.uniform(ku, (B, K, D), dtype=jnp.float32)

    def dense(kk, fan_in, fan_out):
        return (jax.random.normal(kk, (fan_in, fan_out), jnp.float32)
                * (1.0 / jnp.sqrt(fan_in)))

    params = {
        # selection model
        "w1": dense(k1, D, H), "b1": jnp.zeros((1, H), jnp.float32),
        "w2": dense(k2, H, D), "b2": jnp.zeros((1, D), jnp.float32),
        # prediction model
        "w3": dense(k3, D, H), "b3": jnp.zeros((1, H), jnp.float32),
        "w4": dense(k4, H, OUT), "b4": jnp.zeros((1, OUT), jnp.float32),
    }

    ref = l2x_reference(x, uniform, params, tau=TAU)

    # (1) exact-math validation: external noise, exact reciprocal, f32 matmuls.
    out_exact = jax.block_until_ready(
        l2x_forward_with_noise(x, uniform, params, tau=TAU))
    assert out_exact.shape == (B, OUT)
    assert bool(jnp.allclose(out_exact, ref, atol=1e-3, rtol=1e-3)), \
        "mismatch vs JAX reference (exact path)"

    # (2) approx-reciprocal (EUP) numerics: small known deviation, loose check.
    out_approx = jax.block_until_ready(
        l2x_forward_with_noise(x, uniform, params, tau=TAU, approx_recip=True))
    assert bool(jnp.allclose(out_approx, ref, atol=2e-2, rtol=2e-2)), \
        "mismatch vs JAX reference (approx-reciprocal path)"

    # (3) main path: fresh noise drawn from a PRNG key in the wrapper.
    out_main = jax.block_until_ready(
        l2x_forward(x, params, tau=TAU, k=K, key=kn))
    out_main2 = jax.block_until_ready(
        l2x_forward(x, params, tau=TAU, k=K, key=kn))
    assert out_main.shape == (B, OUT)
    assert bool(jnp.all(jnp.isfinite(out_main)))
    assert bool(jnp.array_equal(out_main, out_main2)), \
        "main path not deterministic for a fixed key"

    # (4) bf16 DMA/MXU path (skip on v5e): matmuls in bf16, softmax kept f32.
    out_bf16 = jax.block_until_ready(
        l2x_forward_with_noise(x, uniform, params, tau=TAU, use_bf16=True))
    assert bool(jnp.all(jnp.isfinite(out_bf16)))
    assert float(jnp.max(jnp.abs(out_bf16 - ref))) < 0.5, "bf16 path diverged"

    print("KERNEL_OK")
</pallas_src>

<mosaic_0001>
module attributes {stable_mosaic.version = 11 : i64} {
  func.func @_l2x_kernel(%arg0: i32, %arg1: memref<16x128xf32, #tpu.memory_space<vmem>>, %arg2: memref<4x16x128xf32, #tpu.memory_space<vmem>>, %arg3: memref<32x16xf32, #tpu.memory_space<vmem>>, %arg4: memref<32x1xf32, #tpu.memory_space<vmem>>, %arg5: memref<16x32xf32, #tpu.memory_space<vmem>>, %arg6: memref<16x1xf32, #tpu.memory_space<vmem>>, %arg7: memref<32x16xf32, #tpu.memory_space<vmem>>, %arg8: memref<32x1xf32, #tpu.memory_space<vmem>>, %arg9: memref<2x32xf32, #tpu.memory_space<vmem>>, %arg10: memref<2x1xf32, #tpu.memory_space<vmem>>, %arg11: memref<2x128xf32, #tpu.memory_space<vmem>>) attributes {dimension_semantics = [#tpu.dimension_semantics<parallel>], iteration_bounds = array<i64: 2>, scalar_prefetch = 0 : i64, scratch_operands = 0 : i64, tpu.core_type = #tpu.core_type<tc>, window_params = [{transform_indices = @transform_0, window_bounds = array<i64: 16, 128>}, {transform_indices = @transform_1, window_bounds = array<i64: 4, 16, 128>}, {pipeline_mode = #tpu.pipeline_mode<synchronous>, transform_indices = @transform_2, window_bounds = array<i64: 32, 16>}, {pipeline_mode = #tpu.pipeline_mode<synchronous>, transform_indices = @transform_3, window_bounds = array<i64: 32, 1>}, {pipeline_mode = #tpu.pipeline_mode<synchronous>, transform_indices = @transform_4, window_bounds = array<i64: 16, 32>}, {pipeline_mode = #tpu.pipeline_mode<synchronous>, transform_indices = @transform_5, window_bounds = array<i64: 16, 1>}, {pipeline_mode = #tpu.pipeline_mode<synchronous>, transform_indices = @transform_6, window_bounds = array<i64: 32, 16>}, {pipeline_mode = #tpu.pipeline_mode<synchronous>, transform_indices = @transform_7, window_bounds = array<i64: 32, 1>}, {pipeline_mode = #tpu.pipeline_mode<synchronous>, transform_indices = @transform_8, window_bounds = array<i64: 2, 32>}, {pipeline_mode = #tpu.pipeline_mode<synchronous>, transform_indices = @transform_9, window_bounds = array<i64: 2, 1>}, {transform_indices = @transform_10, window_bounds = array<i64: 2, 128>}]} {
    %c0 = arith.constant 0 : index
    %c0_0 = arith.constant 0 : index
    %0 = vector.load %arg1[%c0, %c0_0] : memref<16x128xf32, #tpu.memory_space<vmem>>, vector<16x128xf32>
    %c0_1 = arith.constant 0 : index
    %c0_2 = arith.constant 0 : index
    %1 = vector.load %arg3[%c0_1, %c0_2] : memref<32x16xf32, #tpu.memory_space<vmem>>, vector<32x16xf32>
    %cst = arith.constant dense<0.000000e+00> : vector<32x128xf32>
    %2 = tpu.matmul %1, %0, %cst {dimension_numbers = #tpu.dot_dimension_numbers<[1], [0], [0], [1], [0, 0, 1, 1], [], []>} : vector<32x16xf32>, vector<16x128xf32>, vector<32x128xf32> -> vector<32x128xf32>
    %c0_3 = arith.constant 0 : index
    %c0_4 = arith.constant 0 : index
    %3 = vector.load %arg4[%c0_3, %c0_4] : memref<32x1xf32, #tpu.memory_space<vmem>>, vector<32x1xf32>
    %4 = vector.broadcast %3 : vector<32x1xf32> to vector<32x128xf32>
    %5 = arith.addf %2, %4 : vector<32x128xf32>
    %cst_5 = arith.constant 0.000000e+00 : f32
    %6 = vector.broadcast %cst_5 : f32 to vector<32x128xf32>
    %7 = arith.maximumf %5, %6 : vector<32x128xf32>
    %c0_6 = arith.constant 0 : index
    %c0_7 = arith.constant 0 : index
    %8 = vector.load %arg5[%c0_6, %c0_7] : memref<16x32xf32, #tpu.memory_space<vmem>>, vector<16x32xf32>
    %cst_8 = arith.constant dense<0.000000e+00> : vector<16x128xf32>
    %9 = tpu.matmul %8, %7, %cst_8 {dimension_numbers = #tpu.dot_dimension_numbers<[1], [0], [0], [1], [0, 0, 1, 1], [], []>} : vector<16x32xf32>, vector<32x128xf32>, vector<16x128xf32> -> vector<16x128xf32>
    %c0_9 = arith.constant 0 : index
    %c0_10 = arith.constant 0 : index
    %10 = vector.load %arg6[%c0_9, %c0_10] : memref<16x1xf32, #tpu.memory_space<vmem>>, vector<16x1xf32>
    %11 = vector.broadcast %10 : vector<16x1xf32> to vector<16x128xf32>
    %12 = arith.addf %9, %11 : vector<16x128xf32>
    %cst_11 = arith.constant 2.000000e+00 : f32
    %13 = vector.broadcast %cst_11 : f32 to vector<16x128xf32>
    %14 = arith.mulf %12, %13 : vector<16x128xf32>
    %cst_12 = arith.constant 0.000000e+00 : f32
    %15 = vector.broadcast %cst_12 : f32 to vector<16x128xf32>
    %c0_13 = arith.constant 0 : index
    %c0_14 = arith.constant 0 : index
    %c0_15 = arith.constant 0 : index
    %16 = vector.load %arg2[%c0_13, %c0_14, %c0_15] : memref<4x16x128xf32, #tpu.memory_space<vmem>>, vector<1x16x128xf32>
    %17 = vector.shape_cast %16 : vector<1x16x128xf32> to vector<16x128xf32>
    %cst_16 = arith.constant 9.99999974E-5 : f32
    %cst_17 = arith.constant 0.999899983 : f32
    %18 = vector.broadcast %cst_16 : f32 to vector<16x128xf32>
    %19 = arith.maximumf %18, %17 : vector<16x128xf32>
    %20 = vector.broadcast %cst_17 : f32 to vector<16x128xf32>
    %21 = arith.minimumf %20, %19 : vector<16x128xf32>
    %22 = math.log %21 : vector<16x128xf32>
    %cst_18 = arith.constant 0.000000e+00 : f32
    %23 = vector.broadcast %cst_18 : f32 to vector<16x128xf32>
    %24 = arith.subf %23, %22 : vector<16x128xf32>
    %25 = math.log %24 : vector<16x128xf32>
    %cst_19 = arith.constant 0.000000e+00 : f32
    %26 = vector.broadcast %cst_19 : f32 to vector<16x128xf32>
    %27 = arith.subf %26, %25 : vector<16x128xf32>
    %cst_20 = arith.constant 2.000000e+00 : f32
    %28 = vector.broadcast %cst_20 : f32 to vector<16x128xf32>
    %29 = arith.mulf %27, %28 : vector<16x128xf32>
    %30 = arith.addf %29, %14 : vector<16x128xf32>
    %cst_21 = arith.constant dense<0xFF800000> : vector<128xf32>
    %31 = vector.multi_reduction <maximumf>, %30, %cst_21 [0] : vector<16x128xf32> to vector<128xf32>
    %32 = vector.shape_cast %31 : vector<128xf32> to vector<1x128xf32>
    %33 = vector.broadcast %32 : vector<1x128xf32> to vector<16x128xf32>
    %34 = arith.subf %30, %33 : vector<16x128xf32>
    %35 = math.exp %34 : vector<16x128xf32>
    %cst_22 = arith.constant dense<0.000000e+00> : vector<128xf32>
    %36 = vector.multi_reduction <add>, %35, %cst_22 [0] : vector<16x128xf32> to vector<128xf32>
    %37 = vector.shape_cast %36 : vector<128xf32> to vector<1x128xf32>
    %38 = tpu.reciprocal %37 : vector<1x128xf32> -> vector<1x128xf32>
    %39 = vector.broadcast %38 : vector<1x128xf32> to vector<16x128xf32>
    %40 = arith.mulf %35, %39 : vector<16x128xf32>
    %41 = arith.maximumf %15, %40 : vector<16x128xf32>
    %c1 = arith.constant 1 : index
    %c0_23 = arith.constant 0 : index
    %c0_24 = arith.constant 0 : index
    %42 = vector.load %arg2[%c1, %c0_23, %c0_24] : memref<4x16x128xf32, #tpu.memory_space<vmem>>, vector<1x16x128xf32>
    %43 = vector.shape_cast %42 : vector<1x16x128xf32> to vector<16x128xf32>
    %cst_25 = arith.constant 9.99999974E-5 : f32
    %cst_26 = arith.constant 0.999899983 : f32
    %44 = vector.broadcast %cst_25 : f32 to vector<16x128xf32>
    %45 = arith.maximumf %44, %43 : vector<16x128xf32>
    %46 = vector.broadcast %cst_26 : f32 to vector<16x128xf32>
    %47 = arith.minimumf %46, %45 : vector<16x128xf32>
    %48 = math.log %47 : vector<16x128xf32>
    %cst_27 = arith.constant 0.000000e+00 : f32
    %49 = vector.broadcast %cst_27 : f32 to vector<16x128xf32>
    %50 = arith.subf %49, %48 : vector<16x128xf32>
    %51 = math.log %50 : vector<16x128xf32>
    %cst_28 = arith.constant 0.000000e+00 : f32
    %52 = vector.broadcast %cst_28 : f32 to vector<16x128xf32>
    %53 = arith.subf %52, %51 : vector<16x128xf32>
    %cst_29 = arith.constant 2.000000e+00 : f32
    %54 = vector.broadcast %cst_29 : f32 to vector<16x128xf32>
    %55 = arith.mulf %53, %54 : vector<16x128xf32>
    %56 = arith.addf %55, %14 : vector<16x128xf32>
    %cst_30 = arith.constant dense<0xFF800000> : vector<128xf32>
    %57 = vector.multi_reduction <maximumf>, %56, %cst_30 [0] : vector<16x128xf32> to vector<128xf32>
    %58 = vector.shape_cast %57 : vector<128xf32> to vector<1x128xf32>
    %59 = vector.broadcast %58 : vector<1x128xf32> to vector<16x128xf32>
    %60 = arith.subf %56, %59 : vector<16x128xf32>
    %61 = math.exp %60 : vector<16x128xf32>
    %cst_31 = arith.constant dense<0.000000e+00> : vector<128xf32>
    %62 = vector.multi_reduction <add>, %61, %cst_31 [0] : vector<16x128xf32> to vector<128xf32>
    %63 = vector.shape_cast %62 : vector<128xf32> to vector<1x128xf32>
    %64 = tpu.reciprocal %63 : vector<1x128xf32> -> vector<1x128xf32>
    %65 = vector.broadcast %64 : vector<1x128xf32> to vector<16x128xf32>
    %66 = arith.mulf %61, %65 : vector<16x128xf32>
    %67 = arith.maximumf %41, %66 : vector<16x128xf32>
    %c2 = arith.constant 2 : index
    %c0_32 = arith.constant 0 : index
    %c0_33 = arith.constant 0 : index
    %68 = vector.load %arg2[%c2, %c0_32, %c0_33] : memref<4x16x128xf32, #tpu.memory_space<vmem>>, vector<1x16x128xf32>
    %69 = vector.shape_cast %68 : vector<1x16x128xf32> to vector<16x128xf32>
    %cst_34 = arith.constant 9.99999974E-5 : f32
    %cst_35 = arith.constant 0.999899983 : f32
    %70 = vector.broadcast %cst_34 : f32 to vector<16x128xf32>
    %71 = arith.maximumf %70, %69 : vector<16x128xf32>
    %72 = vector.broadcast %cst_35 : f32 to vector<16x128xf32>
    %73 = arith.minimumf %72, %71 : vector<16x128xf32>
    %74 = math.log %73 : vector<16x128xf32>
    %cst_36 = arith.constant 0.000000e+00 : f32
    %75 = vector.broadcast %cst_36 : f32 to vector<16x128xf32>
    %76 = arith.subf %75, %74 : vector<16x128xf32>
    %77 = math.log %76 : vector<16x128xf32>
    %cst_37 = arith.constant 0.000000e+00 : f32
    %78 = vector.broadcast %cst_37 : f32 to vector<16x128xf32>
    %79 = arith.subf %78, %77 : vector<16x128xf32>
    %cst_38 = arith.constant 2.000000e+00 : f32
    %80 = vector.broadcast %cst_38 : f32 to vector<16x128xf32>
    %81 = arith.mulf %79, %80 : vector<16x128xf32>
    %82 = arith.addf %81, %14 : vector<16x128xf32>
    %cst_39 = arith.constant dense<0xFF800000> : vector<128xf32>
    %83 = vector.multi_reduction <maximumf>, %82, %cst_39 [0] : vector<16x128xf32> to vector<128xf32>
    %84 = vector.shape_cast %83 : vector<128xf32> to vector<1x128xf32>
    %85 = vector.broadcast %84 : vector<1x128xf32> to vector<16x128xf32>
    %86 = arith.subf %82, %85 : vector<16x128xf32>
    %87 = math.exp %86 : vector<16x128xf32>
    %cst_40 = arith.constant dense<0.000000e+00> : vector<128xf32>
    %88 = vector.multi_reduction <add>, %87, %cst_40 [0] : vector<16x128xf32> to vector<128xf32>
    %89 = vector.shape_cast %88 : vector<128xf32> to vector<1x128xf32>
    %90 = tpu.reciprocal %89 : vector<1x128xf32> -> vector<1x128xf32>
    %91 = vector.broadcast %90 : vector<1x128xf32> to vector<16x128xf32>
    %92 = arith.mulf %87, %91 : vector<16x128xf32>
    %93 = arith.maximumf %67, %92 : vector<16x128xf32>
    %c3 = arith.constant 3 : index
    %c0_41 = arith.constant 0 : index
    %c0_42 = arith.constant 0 : index
    %94 = vector.load %arg2[%c3, %c0_41, %c0_42] : memref<4x16x128xf32, #tpu.memory_space<vmem>>, vector<1x16x128xf32>
    %95 = vector.shape_cast %94 : vector<1x16x128xf32> to vector<16x128xf32>
    %cst_43 = arith.constant 9.99999974E-5 : f32
    %cst_44 = arith.constant 0.999899983 : f32
    %96 = vector.broadcast %cst_43 : f32 to vector<16x128xf32>
    %97 = arith.maximumf %96, %95 : vector<16x128xf32>
    %98 = vector.broadcast %cst_44 : f32 to vector<16x128xf32>
    %99 = arith.minimumf %98, %97 : vector<16x128xf32>
    %100 = math.log %99 : vector<16x128xf32>
    %cst_45 = arith.constant 0.000000e+00 : f32
    %101 = vector.broadcast %cst_45 : f32 to vector<16x128xf32>
    %102 = arith.subf %101, %100 : vector<16x128xf32>
    %103 = math.log %102 : vector<16x128xf32>
    %cst_46 = arith.constant 0.000000e+00 : f32
    %104 = vector.broadcast %cst_46 : f32 to vector<16x128xf32>
    %105 = arith.subf %104, %103 : vector<16x128xf32>
    %cst_47 = arith.constant 2.000000e+00 : f32
    %106 = vector.broadcast %cst_47 : f32 to vector<16x128xf32>
    %107 = arith.mulf %105, %106 : vector<16x128xf32>
    %108 = arith.addf %107, %14 : vector<16x128xf32>
    %cst_48 = arith.constant dense<0xFF800000> : vector<128xf32>
    %109 = vector.multi_reduction <maximumf>, %108, %cst_48 [0] : vector<16x128xf32> to vector<128xf32>
    %110 = vector.shape_cast %109 : vector<128xf32> to vector<1x128xf32>
    %111 = vector.broadcast %110 : vector<1x128xf32> to vector<16x128xf32>
    %112 = arith.subf %108, %111 : vector<16x128xf32>
    %113 = math.exp %112 : vector<16x128xf32>
    %cst_49 = arith.constant dense<0.000000e+00> : vector<128xf32>
    %114 = vector.multi_reduction <add>, %113, %cst_49 [0] : vector<16x128xf32> to vector<128xf32>
    %115 = vector.shape_cast %114 : vector<128xf32> to vector<1x128xf32>
    %116 = tpu.reciprocal %115 : vector<1x128xf32> -> vector<1x128xf32>
    %117 = vector.broadcast %116 : vector<1x128xf32> to vector<16x128xf32>
    %118 = arith.mulf %113, %117 : vector<16x128xf32>
    %119 = arith.maximumf %93, %118 : vector<16x128xf32>
    %120 = arith.mulf %0, %119 : vector<16x128xf32>
    %c0_50 = arith.constant 0 : index
    %c0_51 = arith.constant 0 : index
    %121 = vector.load %arg7[%c0_50, %c0_51] : memref<32x16xf32, #tpu.memory_space<vmem>>, vector<32x16xf32>
    %cst_52 = arith.constant dense<0.000000e+00> : vector<32x128xf32>
    %122 = tpu.matmul %121, %120, %cst_52 {dimension_numbers = #tpu.dot_dimension_numbers<[1], [0], [0], [1], [0, 0, 1, 1], [], []>} : vector<32x16xf32>, vector<16x128xf32>, vector<32x128xf32> -> vector<32x128xf32>
    %c0_53 = arith.constant 0 : index
    %c0_54 = arith.constant 0 : index
    %123 = vector.load %arg8[%c0_53, %c0_54] : memref<32x1xf32, #tpu.memory_space<vmem>>, vector<32x1xf32>
    %124 = vector.broadcast %123 : vector<32x1xf32> to vector<32x128xf32>
    %125 = arith.addf %122, %124 : vector<32x128xf32>
    %cst_55 = arith.constant 0.000000e+00 : f32
    %126 = vector.broadcast %cst_55 : f32 to vector<32x128xf32>
    %127 = arith.maximumf %125, %126 : vector<32x128xf32>
    %c0_56 = arith.constant 0 : index
    %c0_57 = arith.constant 0 : index
    %128 = vector.load %arg9[%c0_56, %c0_57] : memref<2x32xf32, #tpu.memory_space<vmem>>, vector<2x32xf32>
    %cst_58 = arith.constant dense<0.000000e+00> : vector<2x128xf32>
    %129 = tpu.matmul %128, %127, %cst_58 {dimension_numbers = #tpu.dot_dimension_numbers<[1], [0], [0], [1], [0, 0, 1, 1], [], []>} : vector<2x32xf32>, vector<32x128xf32>, vector<2x128xf32> -> vector<2x128xf32>
    %c0_59 = arith.constant 0 : index
    %c0_60 = arith.constant 0 : index
    %130 = vector.load %arg10[%c0_59, %c0_60] : memref<2x1xf32, #tpu.memory_space<vmem>>, vector<2x1xf32>
    %131 = vector.broadcast %130 : vector<2x1xf32> to vector<2x128xf32>
    %132 = arith.addf %129, %131 : vector<2x128xf32>
    %c0_61 = arith.constant 0 : index
    %c0_62 = arith.constant 0 : index
    %133 = vector.load %arg11[%c0_61, %c0_62] : memref<2x128xf32, #tpu.memory_space<vmem>>, vector<2x128xf32>
    tpu.vector_store %arg11[%c0_61, %c0_62], %132 {strides = array<i32>} : memref<2x128xf32, #tpu.memory_space<vmem>>, vector<2x128xf32>,
    return
  }
  func.func @transform_0(%arg0: i32) -> (i32, i32) {
    %c0_i32 = arith.constant 0 : i32
    %c0_i32_0 = arith.constant 0 : i32
    return %c0_i32, %arg0 : i32, i32
  }
  func.func @transform_1(%arg0: i32) -> (i32, i32, i32) {
    %c0_i32 = arith.constant 0 : i32
    %c0_i32_0 = arith.constant 0 : i32
    %c0_i32_1 = arith.constant 0 : i32
    return %c0_i32, %c0_i32_0, %arg0 : i32, i32, i32
  }
  func.func @transform_2(%arg0: i32) -> (i32, i32) {
    %c0_i32 = arith.constant 0 : i32
    %c0_i32_0 = arith.constant 0 : i32
    %c0_i32_1 = arith.constant 0 : i32
    return %c0_i32, %c0_i32_0 : i32, i32
  }
  func.func @transform_3(%arg0: i32) -> (i32, i32) {
    %c0_i32 = arith.constant 0 : i32
    %c0_i32_0 = arith.constant 0 : i32
    %c0_i32_1 = arith.constant 0 : i32
    return %c0_i32, %c0_i32_0 : i32, i32
  }
  func.func @transform_4(%arg0: i32) -> (i32, i32) {
    %c0_i32 = arith.constant 0 : i32
    %c0_i32_0 = arith.constant 0 : i32
    %c0_i32_1 = arith.constant 0 : i32
    return %c0_i32, %c0_i32_0 : i32, i32
  }
  func.func @transform_5(%arg0: i32) -> (i32, i32) {
    %c0_i32 = arith.constant 0 : i32
    %c0_i32_0 = arith.constant 0 : i32
    %c0_i32_1 = arith.constant 0 : i32
    return %c0_i32, %c0_i32_0 : i32, i32
  }
  func.func @transform_6(%arg0: i32) -> (i32, i32) {
    %c0_i32 = arith.constant 0 : i32
    %c0_i32_0 = arith.constant 0 : i32
    %c0_i32_1 = arith.constant 0 : i32
    return %c0_i32, %c0_i32_0 : i32, i32
  }
  func.func @transform_7(%arg0: i32) -> (i32, i32) {
    %c0_i32 = arith.constant 0 : i32
    %c0_i32_0 = arith.constant 0 : i32
    %c0_i32_1 = arith.constant 0 : i32
    return %c0_i32, %c0_i32_0 : i32, i32
  }
  func.func @transform_8(%arg0: i32) -> (i32, i32) {
    %c0_i32 = arith.constant 0 : i32
    %c0_i32_0 = arith.constant 0 : i32
    %c0_i32_1 = arith.constant 0 : i32
    return %c0_i32, %c0_i32_0 : i32, i32
  }
  func.func @transform_9(%arg0: i32) -> (i32, i32) {
    %c0_i32 = arith.constant 0 : i32
    %c0_i32_0 = arith.constant 0 : i32
    %c0_i32_1 = arith.constant 0 : i32
    return %c0_i32, %c0_i32_0 : i32, i32
  }
  func.func @transform_10(%arg0: i32) -> (i32, i32) {
    %c0_i32 = arith.constant 0 : i32
    %c0_i32_0 = arith.constant 0 : i32
    return %c0_i32, %arg0 : i32, i32
  }
}

</mosaic_0001>

<bundles_post_ra>
// kernel: tpu_custom_call.1
= control target key start
LH: loop header
LB: loop body
LE: loop exit
PB: predicated region body
PF: predicated region fallthrough
CT: control target
= control target key end

     0   :  { %s1829_s0 = inlined_call_operand.vmem [shape: f32[16,256], index: 0, kind: input, shape index: {}]   ;;  %s1830_s1 = inlined_call_operand.vmem [shape: f32[4,16,256], index: 1, kind: input, shape index: {}]   ;;  %s1831_s2 = inlined_call_operand.vmem [shape: f32[32,16], index: 2, kind: input, shape index: {}]   ;;  %s1832_s3 = inlined_call_operand.vmem [shape: f32[32,1], index: 3, kind: input, shape index: {}]   ;;  %s1833_s4 = inlined_call_operand.hbm [shape: f32[16,32], index: 4, kind: input, shape index: {}]   ;;  %s1834_s5 = inlined_call_operand.vmem [shape: f32[16,1], index: 5, kind: input, shape index: {}]   ;;  %s1835_s6 = inlined_call_operand.vmem [shape: f32[32,16], index: 6, kind: input, shape index: {}]   ;;  %s1836_s7 = inlined_call_operand.vmem [shape: f32[32,1], index: 7, kind: input, shape index: {}]   ;;  %s1837_s8 = inlined_call_operand.vmem [shape: f32[2,32], index: 8, kind: input, shape index: {}]   ;;  %s1838_s9 = inlined_call_operand.vmem [shape: f32[2,1], index: 9, kind: input, shape index: {}]   ;;  %s1839_s10 = inlined_call_operand.hbm [shape: f32[2,256], index: 10, kind: output, shape index: {}]  }
   0x1   :  { %1843 = sst [smem:[#allocation12_spill]] %s1833_s4 }
   0x2   :  { %15 = vsyncpa [#allocation5], 0 }
   0x3   :  { %16 = vsyncpa [#allocation6], 0 }
   0x4   :  { %18 = vsyncpa [#allocation6 + $0x1], 0  ;;  %s1603_s13 = smov 0   ;;  %s1605_s14 = smov 0  }
   0x5   :  { %s1607_s15 = smov 0   ;;  %s1609_s16 = smov 0  }
   0x6 LB: > { %s1624_s17 = sadd.s32 4294967295, %s1539_s16   ;;  %s1237_s18 = sadd.s32 4294967294, %s1539_s16   ;;  %s1539_s16 = sphi %s1609_s16, %s1853_s16   ;;  %s1535_s15 = sphi %s1607_s15, %s1857_s15   ;;  %s1531_s14 = sphi %s1605_s14, %s1856_s14   ;;  %s1527_s13 = sphi %s1603_s13, %s1855_s13  }
   0x7   : > { %s1628_s19 = sadd.s32 1, %s1539_s16   ;;  %s31_s20 = sadd.s32 1, %s1535_s15 }
   0x8   : > { %1844 = sst [smem:[#allocation10_spill]] %s1628_s19  ;;  %s28_s21 = ssub.s32 %s1539_s16, %s1628_s19 }
   0x9   : > { %p38_p0 = scmp.ne.s32.totalorder %s1535_s15, %s1531_s14  ;;  %p29_p1 = scmp.eq.s32.totalorder %s28_s21, 0 }
   0xa   : > { %p39_p2 = scmp.eq.s32.totalorder %s1539_s16, 0  ;;  %p262_p3 = scmp.eq.s32.totalorder %s1624_s17, 1 }
   0xb   : > { %p267_p4 = scmp.ne.s32.totalorder %s1531_s14, %s1527_s13  ;;  %p268_p7 = scmp.eq.s32.totalorder %s1237_s18, 1 }
   0xc   : > { %s1640_s22 = scalar_select %p29_p1, %s1535_s15, %s31_s20  }
   0xd   : > { %p1642_p5 = por %p39_p2, %p38_p0  ;;  %p1646_p6 = por %p262_p3, %p38_p0 }
   0xe   : > { %1845 = sst [smem:[#allocation11_spill]] %s1640_s22  ;;  %p1238_p8 = scmp.ge.s32.totalorder %s1539_s16, 1 }
   0xf   : > { %s1847_s24 = scalar_select %p1646_p6, 1, 0 }
  0x10   : > { %p275_p9 = scmp.lt.s32.totalorder %s1539_s16, 3  ;;  %p1652_p10 = por %p268_p7, %p267_p4 }
  0x11   : > { %p1350_p11 = scmp.eq.s32.totalorder %s1624_s17, 0  ;;  %s1541_s27 = smov [#allocation4]  }
  0x12   : > { %s1848_s25 = scalar_select %p1652_p10, 1, 0 }
  0x13   : > { %p1657_p12 = pnand %p1238_p8, %p275_p9  ;;  %s293_s28 = sshll.u32 %s1541_s27, 4  ;;  %s294_s28 = int_to_ptr.vmem [resolvable:$true] %s293_s28 }
  0x14   : > { %s1460_s29 = scalar_lea.vmem %s294_s28, 256  ;;  %p1468_p7 = scmp.lt.s32.totalorder %s294_s28, %s294_s28 }
  0x15   : > { %p1342_p13 = pneg %p1657_p12  ;;  %p1461_p2 = scmp.ne.s32.totalorder %s294_s28, %s1460_s29 }
  0x16   : > { %p1469_p10 = scmp.lt.s32.totalorder %s1460_s29, %s1460_s29 }
  0x17   : > { %p1343_p0 = pnand %p1350_p11, %p1342_p13 }
  0x18   : > { %p1470_p6 = por %p1469_p10, %p1468_p7 }
  0x19   : > { %p1451_p1 = pneg %p1343_p0 }
  0x1b   : > { %p1463_p3 = pnand %p1461_p2, %p1451_p1 }
  0x1d   : > { %p1464_p4 = pneg %p1463_p3 }
  0x1f   : > { %p1471_p8 = pnand %p1470_p6, %p1464_p4 }
  0x21   : > { %1474 = shalt.err (!%p1471_p8)
}
  0x22   : > { %s1542_s30 = smov 128   ;;  %s1543_s11 = smov 8  }
  0x23   : > { %s1850_s4 = sld [smem:[#allocation12_spill]]  ;;  %p1240_p9 = scmp.ge.s32.totalorder %s1539_s16, 2 }
  0x25   : > { %318 = sbr.rel (%p1240_p9) target bundleno = 55 (0x37), region = 48 }
  0x29   : > { %1345 = dma.hbm_to_vmem [thread:$0]  (!%p1343_p0), %s1850_s4, 256, %s294_s28, [#allocation5], %s1542_s30, %s1542_s30, %s1543_s11  }
  0x2a   : > { %321 = sbr.rel (!%p1642_p5) target bundleno = 47 (0x2f), region = 52  ;;  %s323_s20 = sand.u32 (%p1642_p5), 1, %s1535_s15  }
  0x2b   : > { %s1242_s21 = sshll.u32 (%p1642_p5), %s1539_s16, 3  ;;  %s1241_s27 = sshll.u32 (%p1642_p5), %s323_s20, 4 }
  0x2c   : > { %s327_s19 = scalar_lea.vmem (%p1642_p5), %s1829_s0, %s1242_s21  ;;  %s325_s28 = scalar_lea.vmem (%p1642_p5), [#allocation2], %s1241_s27 }
  0x2d   : > { %v358_v0 = vld [vmem:[%s327_s19] sm:$0xff] (%p1642_p5)  ;;  %v360_v1 = vld [vmem:[%s327_s19 + $0x10] sm:$0xff] (%p1642_p5) }
  0x2e   : > { %359 = vst [vmem:[%s325_s28] sm:$0xff] (%p1642_p5), %v358_v0  ;;  %361 = vst [vmem:[%s325_s28 + $0x8] sm:$0xff] (%p1642_p5), %v360_v1 }
  0x2f PF: > { %367 = sbr.rel (!%p1642_p5) target bundleno = 55 (0x37), region = 90  ;;  %s369_s30 = sand.u32 (%p1642_p5), 1, %s1535_s15  }
  0x30   : > { %s1244_s11 = sshll.u32 (%p1642_p5), %s1539_s16, 3  ;;  %s1243_s12 = sshll.u32 (%p1642_p5), %s369_s30, 6 }
  0x31   : > { %s373_s4 = scalar_lea.vmem (%p1642_p5), %s1830_s1, %s1244_s11  ;;  %s371_s19 = scalar_lea.vmem (%p1642_p5), [#allocation3], %s1243_s12 }
  0x32   : > { %v416_v2 = vld [vmem:[%s373_s4] sm:$0xff] (%p1642_p5)  ;;  %v418_v3 = vld [vmem:[%s373_s4 + $0x10] sm:$0xff] (%p1642_p5) }
  0x33   : > { %v420_v4 = vld [vmem:[%s373_s4 + $0x20] sm:$0xff] (%p1642_p5)  ;;  %417 = vst [vmem:[%s371_s19] sm:$0xff] (%p1642_p5), %v416_v2  ;;  %419 = vst [vmem:[%s371_s19 + $0x8] sm:$0xff] (%p1642_p5), %v418_v3  ;;  %v422_v5 = vld [vmem:[%s373_s4 + $0x30] sm:$0xff] (%p1642_p5) }
  0x34   : > { %421 = vst [vmem:[%s371_s19 + $0x10] sm:$0xff] %v420_v4  ;;  %v424_v6 = vld [vmem:[%s373_s4 + $0x40] sm:$0xff]  ;;  %v426_v7 = vld [vmem:[%s373_s4 + $0x50] sm:$0xff]  ;;  %423 = vst [vmem:[%s371_s19 + $0x18] sm:$0xff] %v422_v5 }
  0x35   : > { %425 = vst [vmem:[%s371_s19 + $0x20] sm:$0xff] %v424_v6  ;;  %427 = vst [vmem:[%s371_s19 + $0x28] sm:$0xff] %v426_v7  ;;  %v428_v8 = vld [vmem:[%s373_s4 + $0x60] sm:$0xff]  ;;  %v430_v9 = vld [vmem:[%s373_s4 + $0x70] sm:$0xff] }
  0x36   : > { %429 = vst [vmem:[%s371_s19 + $0x30] sm:$0xff] %v428_v8  ;;  %431 = vst [vmem:[%s371_s19 + $0x38] sm:$0xff] %v430_v9 }
  0x37 PF: > { %440 = sbr.rel (%p1657_p12) target bundleno = 970 (0x3ca), region = 128  ;;  %s1688_s22 = sand.u32 (!%p1657_p12), 1, %s1531_s14  }
  0x38   : > { %s1246_s23 = sshll.u32 (!%p1657_p12), %s1688_s22, 4  ;;  %s1247_s21 = sshll.u32 (!%p1657_p12), %s1688_s22, 6 }
  0x39   : > { %s445_s27 = scalar_lea.vmem (!%p1657_p12), [#allocation2], %s1246_s23  ;;  %s1692_s29 = scalar_lea.vmem (!%p1657_p12), [#allocation3], %s1247_s21 }
  0x3c   : > { %1518 = dma.done.wait (%p1350_p11), [#allocation5], 256  }
  0x3d   : > { %1520 = vsyncadd (%p1350_p11), [#allocation5], 4294967040  ;;  %v1544_v10 = vmov 0   ;;  %vm525_vm0 = vcmask 130048   ;;  %v1698_v11 = vld [vmem:[%s445_s27 + $0x8] sm:$0xff]  ;;  %v1700_v12 = vld [vmem:[%s445_s27] sm:$0xff] }
  0x3e   : > { %1391 = vset.pattern.permute.xlu0 %v1544_v10  ;;  %1392 = vset.pattern.permute.xlu1 %v1544_v10  ;;  %v497_v13 = vld [vmem:[%s1831_s2] sm:$0xff]  ;;  %v498_v14 = vld [vmem:[%s1831_s2 + $0x8] sm:$0xff]  ;;  %v504_v15 = vld [vmem:[%s1832_s3 + $0x18] sm:$0xff]  ;;  %vm641_vm1 = vcmask 261120   ;;  %vm1546_vm2 = vmmov 0   ;;  %s1249_s30 = sshll.u32 %s1688_s22, 1 }
  0x3f   : > { %1294 = vmatprep.subr.mxu0 %v1698_v11  ;;  %1298 = vmatprep.mubr.msk.f32.mxu0 %vm525_vm0, %v497_v13  ;;  %v499_v16 = vld [vmem:[%s1831_s2 + $0x10] sm:$0xff]  ;;  %v502_v17 = vld [vmem:[%s1832_s3 + $0x8] sm:$0xff]  ;;  %v501_v19 = vld [vmem:[%s1832_s3] sm:$0xff]  ;;  %s1268_s11 = sshll.u32 %s1624_s17, 5  ;;  %s494_s12 = scalar_lea.vmem [#allocation7], %s1249_s30 }
  0x40   : > { %1295 = vmatpush3.msra.mxu0 %v1698_v11  ;;  %522 = vperm.xlu0 %1391, %v504_v15   ;;  %v503_v18 = vld [vmem:[%s1832_s3 + $0x10] sm:$0xff]  ;;  %v500_v20 = vld [vmem:[%s1831_s2 + $0x18] sm:$0xff]  ;;  %v629_v21 = vld [vmem:[%s1834_s5] sm:$0xff]  ;;  %s1142_s18 = sshll.u32 %s494_s12, 4  ;;  %s1792_s19 = scalar_lea.hbm %s1839_s10, %s1268_s11  ;;  %s1143_s18 = int_to_ptr.vmem [resolvable:$true] %s1142_s18 }
  0x41   : > { %1296 = vmatprep.subr.mxu0 %v1700_v12  ;;  %512 = vperm.xlu1 %1392, %v502_v17   ;;  %v630_v22 = vld [vmem:[%s1834_s5 + $0x8] sm:$0xff]  ;;  %v925_v23 = vld [vmem:[%s1836_s7 + $0x18] sm:$0xff]  ;;  %v924_v24 = vld [vmem:[%s1836_s7 + $0x10] sm:$0xff]  ;;  %s1129_s23 = scalar_lea.sflag [#allocation6], %s1688_s22  ;;  %s1475_s21 = scalar_lea.vmem %s1143_s18, 32 }
  0x42   : > { %1297 = vmatpush3.msra.mxu0 %v1700_v12  ;;  %v923_v25 = vld [vmem:[%s1836_s7 + $0x8] sm:$0xff]  ;;  %v922_v26 = vld [vmem:[%s1836_s7] sm:$0xff]  ;;  %v1257_v47 = vld [vmem:[%s1692_s29 + $0x18] sm:$0xff]  ;;  %p1476_p5 = scmp.ne.s32.totalorder %s1143_s18, %s1475_s21  ;;  %p1851_p6 = scmp.ne.s32.totalorder %s1847_s24, 0 }
  0x43   : > { %1299 = vmatmul.mubr.msk.f32.vlgmr.msra.gmra.mxu0 %vm525_vm0, %v498_v14  ;;  %v1048_v27 = vld [vmem:[%s1838_s9] sm:$0x3]  ;;  %v628_v45 = vld [vmem:[#allocation4 + $0x8] sm:$0xff]  ;;  %v1261_v50 = vld [vmem:[%s1692_s29 + $0x38] sm:$0xff]  ;;  %v776_v51 = vmax.f32 %v1257_v47, 0.0001 }
  0x44   : > { %1301 = vmatprep.mubr.msk.f32.mxu0 %vm525_vm0, %v499_v16  ;;  %517 = vperm.xlu0 %1391, %v503_v18   ;;  %v627_v28 = vld [vmem:[#allocation4] sm:$0xff]  ;;  %v726_v46 = vld [vmem:[%s1692_s29 + $0x8] sm:$0xff]  ;;  %v1256_v54 = vld [vmem:[%s1692_s29 + $0x10] sm:$0xff]  ;;  %v872_v55 = vmax.f32 %v1261_v50, 0.0001  ;;  %p1477_p10 = pnand %p1476_p5, %p1851_p6  ;;  %s1547_s17 = smov [#allocation7]  }
  0x45   : > { %507 = vperm.xlu1 %1392, %v501_v19   ;;  %1312 = vmatprep.mubr.msk.f32.mxu1 %vm641_vm1, %v627_v28  ;;  %v1259_v48 = vld [vmem:[%s1692_s29 + $0x28] sm:$0xff]  ;;  %v728_v49 = vmax.f32 %v726_v46, 0.0001  ;;  %v725_v52 = vld [vmem:[%s1692_s29] sm:$0xff]  ;;  %v1260_v59 = vld [vmem:[%s1692_s29 + $0x30] sm:$0xff]  ;;  %s1479_s27 = sshll.u32 %s1547_s17, 4  ;;  %s1480_s27 = int_to_ptr.vmem [resolvable:$false] %s1479_s27 }
  0x46   : > { %v824_v53 = vmax.f32 %v1259_v48, 0.0001  ;;  %v1258_v56 = vld [vmem:[%s1692_s29 + $0x20] sm:$0xff]  ;;  %v727_v58 = vmax.f32 %v725_v52, 0.0001  ;;  %p1478_p11 = pneg %p1477_p10  ;;  %s1481_s4 = scalar_lea.vmem %s1480_s27, 64 }
  0x47   : > { %1302 = vmatmul.mubr.msk.f32.gmra.mxu0 %vm525_vm0, %v500_v20  ;;  %v730_v57 = vmin.f32 %v728_v49, 0.9999  ;;  %v778_v60 = vmin.f32 %v776_v51, 0.9999  ;;  %v775_v61 = vmax.f32 %v1256_v54, 0.0001  ;;  %p1482_p12 = scmp.lt.s32.totalorder %s1143_s18, %s1480_s27  ;;  %p1483_p13 = scmp.lt.s32.totalorder %s1481_s4, %s1475_s21 }
  0x48   : > { %633 = vperm.xlu0 %1391, %v629_v21   ;;  %v826_v62 = vmin.f32 %v824_v53, 0.9999  ;;  %v823_v63 = vmax.f32 %v1258_v56, 0.0001  ;;  %v874_v0 = vmin.f32 %v872_v55, 0.9999 }
  0x49   : > { %638 = vperm.xlu1 %1392, %v630_v22   ;;  %v871_v1 = vmax.f32 %v1260_v59, 0.0001  ;;  %1393 = vlog2.f32 %v730_v57  ;;  %v729_v2 = vmin.f32 %v727_v58, 0.9999  ;;  %v777_v3 = vmin.f32 %v775_v61, 0.9999  ;;  %p1484_p0 = por %p1483_p13, %p1482_p12 }
  0x4a   : > { %1395 = vlog2.f32 %v778_v60  ;;  %v825_v4 = vmin.f32 %v823_v63, 0.9999  ;;  %v918_v6 = vld [vmem:[%s1835_s6] sm:$0xff] }
  0x4b   : > { %1397 = vlog2.f32 %v826_v62  ;;  %v873_v5 = vmin.f32 %v871_v1, 0.9999  ;;  %1319 = vmatprep.mubr.msk.f32.mxu0 %vm525_vm0, %v918_v6  ;;  %p1485_p1 = pnand %p1484_p0, %p1478_p11 }
  0x4c   : > { %943 = vperm.xlu0 %1391, %v925_v23   ;;  %1399 = vlog2.f32 %v874_v0 }
  0x4d   : > { %938 = vperm.xlu1 %1392, %v924_v24   ;;  %1401 = vlog2.f32 %v729_v2 }
  0x4e   : > { %1403 = vlog2.f32 %v777_v3 }
  0x4f   : > { %1405 = vlog2.f32 %v825_v4 }
  0x50   : > { %933 = vperm.xlu0 %1391, %v923_v25   ;;  %1407 = vlog2.f32 %v873_v5 }
  0x51   : > { %928 = vperm.xlu1 %1392, %v922_v26  }
  0x54   : > { %1051 = vperm.xlu0 %1391, %v1048_v27  }
  0x56   : > { %v1394_v7 = vpop.eup %1393 }
  0x57   : > { %v1396_v8 = vpop.eup %1395  ;;  %v734_v13 = vmul.f32 0.6931472, %v1394_v7 }
  0x58   : > { %v1398_v9 = vpop.eup %1397  ;;  %v782_v15 = vmul.f32 0.6931472, %v1396_v8 }
  0x59   : > { %v1400_v10 = vpop.eup %1399  ;;  %v830_v17 = vmul.f32 0.6931472, %v1398_v9  ;;  %v736_v21 = vsub.f32 0.0, %v734_v13 }
  0x5a   : > { %v1402_v14 = vpop.eup %1401  ;;  %v878_v19 = vmul.f32 0.6931472, %v1400_v10  ;;  %v784_v23 = vsub.f32 0.0, %v782_v15 }
  0x5b   : > { %v1404_v16 = vpop.eup %1403  ;;  %v732_v22 = vmul.f32 0.6931472, %v1402_v14  ;;  %v832_v25 = vsub.f32 0.0, %v830_v17  ;;  %1409 = vlog2.f32 %v736_v21 }
  0x5c   : > { %v1406_v18 = vpop.eup %1405  ;;  %v780_v24 = vmul.f32 0.6931472, %v1404_v16  ;;  %v880_v27 = vsub.f32 0.0, %v878_v19  ;;  %1411 = vlog2.f32 %v784_v23 }
  0x5d   : > { %v1408_v20 = vpop.eup %1407  ;;  %v828_v26 = vmul.f32 0.6931472, %v1406_v18  ;;  %1413 = vlog2.f32 %v832_v25 }
  0x5e   : > { %v876_v28 = vmul.f32 0.6931472, %v1408_v20  ;;  %1415 = vlog2.f32 %v880_v27 }
  0xbb   : > { %v523_v29 = vpop.permute.xlu0 %522 }
  0xbc   : > { %v513_v31 = vpop.permute.xlu1 %512 }
  0xbf   : > { %v518_v35 = vpop.permute.xlu0 %517 }
  0xc0   : > { %v508_v40 = vpop.permute.xlu1 %507 }
  0xc3   : > { %v634_v60 = vpop.permute.xlu0 %633 }
  0xc4   : > { %v639_v53 = vpop.permute.xlu1 %638 }
 0x103   : > { %v1300_v30 = vpop.f32.mrf.mxu0 }
 0x104   : > { %v610_v37 = vadd.f32 %v1300_v30, %v513_v31  ;;  %v783_v30 = vsub.f32 0.0, %v780_v24  ;;  %v831_v31 = vsub.f32 0.0, %v828_v26 }
 0x105   : > { %v604_v32 = vpop.f32.mrf.mxu0 }
 0x106   : > { %v605_v41 = vadd.f32 %v604_v32, %v508_v40  ;;  %v624_v43 = vmax.f32 %v610_v37, 0.0  ;;  %v879_v32 = vsub.f32 0.0, %v876_v28 }
 0x107   : > { %v1303_v33 = vpop.f32.mrf.mxu0 }
 0x108   : > { %v620_v34 = vadd.f32 %v1303_v33, %v523_v29  ;;  %v623_v44 = vmax.f32 %v605_v41, 0.0  ;;  %v735_v29 = vsub.f32 0.0, %v732_v22  ;;  %v1410_v33 = vpop.eup %1409 }
 0x109   : > { %v614_v36 = vpop.f32.mrf.mxu0  ;;  %v740_v41 = vmul.f32 0.6931472, %v1410_v33 }
 0x10a   : > { %v626_v38 = vmax.f32 %v620_v34, 0.0  ;;  %v615_v39 = vadd.f32 %v614_v36, %v518_v35  ;;  %1417 = vlog2.f32 %v735_v29  ;;  %v1412_v34 = vpop.eup %1411 }
 0x10b   : > { %1419 = vlog2.f32 %v783_v30  ;;  %v1414_v35 = vpop.eup %1413  ;;  %v742_v49 = vsub.f32 0.0, %v740_v41 }
 0x10c   : > { %v625_v42 = vmax.f32 %v615_v39, 0.0  ;;  %1304 = vmatprep.subr.mxu1 %v626_v38  ;;  %1421 = vlog2.f32 %v831_v31  ;;  %v1416_v36 = vpop.eup %1415 }
 0x10d   : > { %1305 = vmatpush3.msra.mxu1 %v626_v38  ;;  %1423 = vlog2.f32 %v879_v32  ;;  %v744_v61 = vmul.f32 2.0, %v742_v49 }
 0x10e   : > { %1306 = vmatprep.subr.mxu1 %v625_v42 }
 0x10f   : > { %1307 = vmatpush3.msra.mxu1 %v625_v42  ;;  %v788_v42 = vmul.f32 0.6931472, %v1412_v34 }
 0x110   : > { %1308 = vmatprep.subr.mxu1 %v624_v43 }
 0x111   : > { %1309 = vmatpush3.msra.mxu1 %v624_v43  ;;  %v836_v43 = vmul.f32 0.6931472, %v1414_v35  ;;  %v790_v50 = vsub.f32 0.0, %v788_v42 }
 0x112   : > { %1310 = vmatprep.subr.mxu1 %v623_v44 }
 0x113   : > { %1311 = vmatpush3.msra.mxu1 %v623_v44  ;;  %v884_v44 = vmul.f32 0.6931472, %v1416_v36  ;;  %v838_v51 = vsub.f32 0.0, %v836_v43  ;;  %v792_v62 = vmul.f32 2.0, %v790_v50 }
 0x114   : > { %1313 = vmatmul.mubr.msk.f32.vlgmr.msra.gmra.mxu1 %vm641_vm1, %v628_v45 }
 0x115   : > { %v886_v52 = vsub.f32 0.0, %v884_v44  ;;  %v840_v1 = vmul.f32 2.0, %v838_v51 }
 0x117   : > { %v1418_v37 = vpop.eup %1417  ;;  %v888_v2 = vmul.f32 2.0, %v886_v52 }
 0x118   : > { %v1420_v38 = vpop.eup %1419  ;;  %v738_v45 = vmul.f32 0.6931472, %v1418_v37 }
 0x119   : > { %v1422_v39 = vpop.eup %1421  ;;  %v786_v46 = vmul.f32 0.6931472, %v1420_v38 }
 0x11a   : > { %v1424_v40 = vpop.eup %1423  ;;  %v834_v47 = vmul.f32 0.6931472, %v1422_v39  ;;  %v741_v55 = vsub.f32 0.0, %v738_v45 }
 0x11b   : > { %v882_v48 = vmul.f32 0.6931472, %v1424_v40  ;;  %v789_v56 = vsub.f32 0.0, %v786_v46 }
 0x11c   : > { %v837_v57 = vsub.f32 0.0, %v834_v47  ;;  %v743_v4 = vmul.f32 2.0, %v741_v55 }
 0x11d   : > { %v885_v58 = vsub.f32 0.0, %v882_v48  ;;  %v791_v5 = vmul.f32 2.0, %v789_v56 }
 0x11e   : > { %v839_v6 = vmul.f32 2.0, %v837_v57 }
 0x11f   : > { %v887_v7 = vmul.f32 2.0, %v885_v58 }
 0x1d4   : > { %v1314_v54 = vpop.f32.mrf.mxu1 }
 0x1d5   : > { %v720_v59 = vadd.f32 %v1314_v54, %v639_v53 }
 0x1d6   : > { %v714_v63 = vpop.f32.mrf.mxu1 }
 0x1d7   : > { %v724_v0 = vmul.f32 2.0, %v720_v59  ;;  %v715_v3 = vadd.f32 %v714_v63, %v634_v60 }
 0x1d9   : > { %v723_v8 = vmul.f32 2.0, %v715_v3  ;;  %v746_v9 = vadd.f32 %v744_v61, %v724_v0  ;;  %v794_v10 = vadd.f32 %v792_v62, %v724_v0  ;;  %v842_v13 = vadd.f32 %v840_v1, %v724_v0 }
 0x1da   : > { %v890_v14 = vadd.f32 %v888_v2, %v724_v0 }
 0x1db   : > { %v745_v15 = vadd.f32 %v743_v4, %v723_v8  ;;  %v793_v16 = vadd.f32 %v791_v5, %v723_v8  ;;  %v841_v17 = vadd.f32 %v839_v6, %v723_v8  ;;  %v889_v18 = vadd.f32 %v887_v7, %v723_v8 }
 0x1dd   : > { %v747_v19 = vmax.f32 %v745_v15, %v746_v9  ;;  %v795_v20 = vmax.f32 %v793_v16, %v794_v10  ;;  %v843_v21 = vmax.f32 %v841_v17, %v842_v13  ;;  %v891_v22 = vmax.f32 %v889_v18, %v890_v14 }
 0x1df   : > { %v748_v23 = vrot.slane %v747_v19, 4  ;;  %v796_v24 = vrot.slane %v795_v20, 4  ;;  %v844_v25 = vrot.slane %v843_v21, 4  ;;  %v892_v26 = vrot.slane %v891_v22, 4 }
 0x1e1   : > { %v749_v27 = vmax.f32 %v747_v19, %v748_v23  ;;  %v797_v28 = vmax.f32 %v795_v20, %v796_v24  ;;  %v845_v29 = vmax.f32 %v843_v21, %v844_v25  ;;  %v893_v30 = vmax.f32 %v891_v22, %v892_v26 }
 0x1e3   : > { %v750_v31 = vrot.slane %v749_v27, 2  ;;  %v798_v32 = vrot.slane %v797_v28, 2  ;;  %v846_v33 = vrot.slane %v845_v29, 2  ;;  %v894_v34 = vrot.slane %v893_v30, 2 }
 0x1e5   : > { %v751_v35 = vmax.f32 %v749_v27, %v750_v31  ;;  %v799_v36 = vmax.f32 %v797_v28, %v798_v32  ;;  %v847_v37 = vmax.f32 %v845_v29, %v846_v33  ;;  %v895_v38 = vmax.f32 %v893_v30, %v894_v34 }
 0x1e7   : > { %v752_v39 = vrot.slane %v751_v35, 1  ;;  %v800_v40 = vrot.slane %v799_v36, 1  ;;  %v848_v41 = vrot.slane %v847_v37, 1  ;;  %v896_v42 = vrot.slane %v895_v38, 1 }
 0x1e9   : > { %v753_v43 = vmax.f32 %v751_v35, %v752_v39  ;;  %v801_v44 = vmax.f32 %v799_v36, %v800_v40  ;;  %v849_v45 = vmax.f32 %v847_v37, %v848_v41  ;;  %v897_v46 = vmax.f32 %v895_v38, %v896_v42 }
 0x1eb   : > { %v754_v47 = vsub.f32 %v745_v15, %v753_v43  ;;  %v755_v48 = vsub.f32 %v746_v9, %v753_v43  ;;  %v802_v49 = vsub.f32 %v793_v16, %v801_v44  ;;  %v803_v50 = vsub.f32 %v794_v10, %v801_v44 }
 0x1ec   : > { %v850_v51 = vsub.f32 %v841_v17, %v849_v45  ;;  %v851_v52 = vsub.f32 %v842_v13, %v849_v45  ;;  %v898_v56 = vsub.f32 %v889_v18, %v897_v46  ;;  %v899_v58 = vsub.f32 %v890_v14, %v897_v46 }
 0x1ed   : > { %v756_v53 = vmul.f32 1.442695, %v754_v47  ;;  %v758_v54 = vmul.f32 1.442695, %v755_v48  ;;  %v804_v55 = vmul.f32 1.442695, %v802_v49 }
 0x1ee   : > { %v806_v57 = vmul.f32 1.442695, %v803_v50  ;;  %v852_v59 = vmul.f32 1.442695, %v850_v51  ;;  %v854_v60 = vmul.f32 1.442695, %v851_v52 }
 0x1ef   : > { %1425 = vpow2.f32 %v756_v53  ;;  %v900_v61 = vmul.f32 1.442695, %v898_v56  ;;  %v902_v62 = vmul.f32 1.442695, %v899_v58 }
 0x1f0   : > { %1427 = vpow2.f32 %v758_v54 }
 0x1f1   : > { %1429 = vpow2.f32 %v804_v55 }
 0x1f2   : > { %1431 = vpow2.f32 %v806_v57 }
 0x1f3   : > { %1433 = vpow2.f32 %v852_v59  ;;  %v919_v59 = vld [vmem:[%s1835_s6 + $0x8] sm:$0xff] }
 0x1f4   : > { %1435 = vpow2.f32 %v854_v60  ;;  %v920_v60 = vld [vmem:[%s1835_s6 + $0x10] sm:$0xff] }
 0x1f5   : > { %1437 = vpow2.f32 %v900_v61  ;;  %v944_v61 = vpop.permute.xlu0 %943 }
 0x1f6   : > { %1439 = vpow2.f32 %v902_v62 }
 0x1fc   : > { %v1426_v63 = vpop.eup %1425 }
 0x1fd   : > { %v1428_v0 = vpop.eup %1427 }
 0x1fe   : > { %v1430_v1 = vpop.eup %1429  ;;  %v760_v2 = vadd.f32 %v1428_v0, %v1426_v63 }
 0x1ff   : > { %v1432_v3 = vpop.eup %1431 }
 0x200   : > { %v1434_v4 = vpop.eup %1433  ;;  %v761_v5 = vrot.slane %v760_v2, 4  ;;  %v808_v6 = vadd.f32 %v1432_v3, %v1430_v1 }
 0x201   : > { %v1436_v7 = vpop.eup %1435 }
 0x202   : > { %v1438_v8 = vpop.eup %1437  ;;  %v762_v9 = vadd.f32 %v761_v5, %v760_v2  ;;  %v809_v10 = vrot.slane %v808_v6, 4  ;;  %v856_v13 = vadd.f32 %v1436_v7, %v1434_v4 }
 0x203   : > { %v1440_v14 = vpop.eup %1439 }
 0x204   : > { %v763_v15 = vrot.slane %v762_v9, 2  ;;  %v810_v16 = vadd.f32 %v809_v10, %v808_v6  ;;  %v857_v17 = vrot.slane %v856_v13, 4  ;;  %v904_v18 = vadd.f32 %v1440_v14, %v1438_v8 }
 0x206   : > { %v811_v19 = vrot.slane %v810_v16, 2  ;;  %v858_v20 = vadd.f32 %v857_v17, %v856_v13  ;;  %v905_v21 = vrot.slane %v904_v18, 4  ;;  %v764_v22 = vadd.f32 %v763_v15, %v762_v9  ;;  %v1047_v15 = vld [vmem:[%s1837_s8] sm:$0x3] }
 0x208   : > { %v765_v23 = vrot.slane %v764_v22, 1  ;;  %v812_v24 = vadd.f32 %v811_v19, %v810_v16  ;;  %v859_v25 = vrot.slane %v858_v20, 2  ;;  %v906_v26 = vadd.f32 %v905_v21, %v904_v18 }
 0x20a   : > { %v766_v27 = vadd.f32 %v765_v23, %v764_v22  ;;  %v813_v28 = vrot.slane %v812_v24, 1  ;;  %v860_v29 = vadd.f32 %v859_v25, %v858_v20  ;;  %v907_v30 = vrot.slane %v906_v26, 2 }
 0x20c   : > { %1441 = vrcp.f32 %v766_v27  ;;  %v814_v31 = vadd.f32 %v813_v28, %v812_v24  ;;  %v861_v32 = vrot.slane %v860_v29, 1  ;;  %v908_v33 = vadd.f32 %v907_v30, %v906_v26 }
 0x20e   : > { %1443 = vrcp.f32 %v814_v31  ;;  %v862_v34 = vadd.f32 %v861_v32, %v860_v29  ;;  %v909_v35 = vrot.slane %v908_v33, 1 }
 0x210   : > { %1445 = vrcp.f32 %v862_v34  ;;  %v910_v36 = vadd.f32 %v909_v35, %v908_v33 }
 0x212   : > { %1447 = vrcp.f32 %v910_v36 }
 0x219   : > { %v1442_v37 = vpop.eup %1441 }
 0x21a   : > { %v769_v38 = vmul.f32 %v1442_v37, %v1428_v0  ;;  %v768_v39 = vmul.f32 %v1442_v37, %v1426_v63  ;;  %v939_v63 = vpop.permute.xlu1 %938 }
 0x21b   : > { %v1444_v40 = vpop.eup %1443 }
 0x21c   : > { %v771_v41 = vmax.f32 %v769_v38, 0.0  ;;  %v817_v42 = vmul.f32 %v1444_v40, %v1432_v3  ;;  %v770_v43 = vmax.f32 %v768_v39, 0.0  ;;  %v816_v44 = vmul.f32 %v1444_v40, %v1430_v1  ;;  %v934_v3 = vpop.permute.xlu0 %933 }
 0x21d   : > { %v1446_v45 = vpop.eup %1445 }
 0x21e   : > { %v819_v46 = vmax.f32 %v771_v41, %v817_v42  ;;  %v865_v47 = vmul.f32 %v1446_v45, %v1436_v7  ;;  %v818_v48 = vmax.f32 %v770_v43, %v816_v44  ;;  %v864_v49 = vmul.f32 %v1446_v45, %v1434_v4 }
 0x21f   : > { %v1448_v50 = vpop.eup %1447 }
 0x220   : > { %v867_v51 = vmax.f32 %v819_v46, %v865_v47  ;;  %v913_v52 = vmul.f32 %v1448_v50, %v1440_v14  ;;  %v866_v53 = vmax.f32 %v818_v48, %v864_v49  ;;  %v912_v54 = vmul.f32 %v1448_v50, %v1438_v8  ;;  %v929_v8 = vpop.permute.xlu1 %928  ;;  %v1052_v16 = vpop.permute.xlu0 %1051 }
 0x222   : > { %v915_v55 = vmax.f32 %v867_v51, %v913_v52  ;;  %v914_v56 = vmax.f32 %v866_v53, %v912_v54 }
 0x224   : > { %v917_v57 = vmul.f32 %v915_v55, %v1698_v11  ;;  %v916_v58 = vmul.f32 %v914_v56, %v1700_v12  ;;  %v921_v11 = vld [vmem:[%s1835_s6 + $0x18] sm:$0xff]  ;;  %v1545_v12 = vmov 0.0  }
 0x225   : > { %1325 = vmatprep.subr.mxu1 %v1545_v12  ;;  %1333 = vmatprep.mubr.msk.f32.mxu1 %vm1546_vm2, %v1545_v12 }
 0x226   : > { %1315 = vmatprep.subr.mxu0 %v917_v57 }
 0x227   : > { %1316 = vmatpush3.msra.mxu0 %v917_v57 }
 0x228   : > { %1317 = vmatprep.subr.mxu0 %v916_v58 }
 0x229   : > { %1318 = vmatpush3.msra.mxu0 %v916_v58 }
 0x22a   : > { %1320 = vmatmul.mubr.msk.f32.vlgmr.msra.gmra.mxu0 %vm525_vm0, %v919_v59 }
 0x22b   : > { %1322 = vmatprep.mubr.msk.f32.mxu0 %vm525_vm0, %v920_v60 }
 0x22e   : > { %1323 = vmatmul.mubr.msk.f32.gmra.mxu0 %vm525_vm0, %v921_v11 }
 0x2ea   : > { %v1321_v62 = vpop.f32.mrf.mxu0 }
 0x2eb   : > { %v1030_v5 = vadd.f32 %v1321_v62, %v934_v3 }
 0x2ec   : > { %v1024_v0 = vpop.f32.mrf.mxu0 }
 0x2ed   : > { %v1025_v9 = vadd.f32 %v1024_v0, %v929_v8  ;;  %v1044_v13 = vmax.f32 %v1030_v5, 0.0 }
 0x2ee   : > { %v1324_v1 = vpop.f32.mrf.mxu0 }
 0x2ef   : > { %v1040_v2 = vadd.f32 %v1324_v1, %v944_v61  ;;  %v1043_v14 = vmax.f32 %v1025_v9, 0.0 }
 0x2f0   : > { %v1034_v4 = vpop.f32.mrf.mxu0 }
 0x2f1   : > { %v1046_v6 = vmax.f32 %v1040_v2, 0.0  ;;  %v1035_v7 = vadd.f32 %v1034_v4, %v939_v63 }
 0x2f3   : > { %v1045_v10 = vmax.f32 %v1035_v7, 0.0  ;;  %1326 = vmatpush3.msra.mxu1 %v1046_v6 }
 0x2f4   : > { %1327 = vmatprep.subr.mxu1 %v1545_v12 }
 0x2f5   : > { %1328 = vmatpush3.msra.mxu1 %v1045_v10 }
 0x2f6   : > { %1329 = vmatprep.subr.mxu1 %v1545_v12 }
 0x2f7   : > { %1330 = vmatpush3.msra.mxu1 %v1044_v13 }
 0x2f8   : > { %1331 = vmatprep.subr.mxu1 %v1545_v12 }
 0x2f9   : > { %1332 = vmatpush3.msra.mxu1 %v1043_v14 }
 0x2fa   : > { %1334 = vmatmul.mubr.msk.f32.vlgmr.msra.gmra.mxu1 %vm641_vm1, %v1047_v15 }
 0x3ba   : > { %v1123_v17 = vpop.f32.mrf.mxu1 }
 0x3bb   : > { %v1124_v18 = vadd.f32 %v1123_v17, %v1052_v16 }
 0x3bc   : > { %v1335_v19 = vpop.f32.mrf.mxu1 }
 0x3bd   : > { %1127 = vst [vmem:[%s494_s12] sm:$0x3] %v1124_v18 }
 0x3be   : > { %1488 = shalt.err (!%p1485_p1)
}
 0x3bf   : > { %s1489_s26 = scalar_lea.hbm %s1792_s19, 32  ;;  %s1493_s30 = scalar_lea.hbm %s1839_s10, 64 }
 0x3c0   : > { %p1490_p2 = scmp.ne.s32.totalorder %s1792_s19, %s1489_s26  ;;  %p1494_p7 = scmp.lt.s32.totalorder %s1792_s19, %s1839_s10 }
 0x3c1   : > { %p1495_p8 = scmp.lt.s32.totalorder %s1493_s30, %s1489_s26 }
 0x3c2   : > { %p1491_p3 = pnand %p1490_p2, %p1851_p6 }
 0x3c3   : > { %p1496_p5 = por %p1495_p8, %p1494_p7 }
 0x3c4   : > { %p1492_p4 = pneg %p1491_p3 }
 0x3c6   : > { %p1497_p10 = pnand %p1496_p5, %p1492_p4 }
 0x3c8   : > { %1500 = shalt.err (!%p1497_p10)
}
 0x3c9   : > { %1340 = dma.vmem_to_hbm [thread:$0]  (%p1851_p6), %s1143_s18, 32, %s1792_s19, %s1129_s23  }
 0x3ca PF: > { %s1154_s29 = sand.u32 1, %s1527_s13   ;;  %p1852_p11 = scmp.ne.s32.totalorder %s1848_s25, 0 }
 0x3cb   : > { %s1155_s20 = scalar_lea.sflag [#allocation6], %s1154_s29 }
 0x3cc   : > { %p1347_p12 = pnand %p1240_p9, %p1852_p11 }
 0x3ce   : > { %p1348_p13 = pneg %p1347_p12 }
 0x3d0   : > { %1522 = dma.done.wait (%p1348_p13), %s1155_s20, 32  }
 0x3d1   : > { %1524 = vsyncadd (%p1348_p13), %s1155_s20, 4294967264  ;;  %s1853_s16 = sld [smem:[#allocation10_spill]]  ;;  %s1855_s13 = smov %s1531_s14 }
 0x3d2   : > { %s1854_s21 = sld [smem:[#allocation11_spill]]  ;;  %s1856_s14 = smov %s1535_s15 }
 0x3d7   : > { %p21_p0 = scmp.ge.s32.totalorder %s1853_s16, 4  }
 0x3d8   : > { %s1857_s15 = smov %s1854_s21 }
 0x3d9   :  { %23 = sbr.rel (!%p21_p0) target bundleno = 6 (0x6), region = 192 }
 0x3de   :  { %1160 = vsyncpa [#allocation5], 1 }
 0x3df   :  { %1162 = vsyncpa [#allocation5 + $0x1], 1 }
 0x3e0   :  { %1163 = vsyncpa [#allocation6], 1 }
 0x3e1   :  { %1165 = vsyncpa [#allocation6 + $0x1], 1 }

</bundles_post_ra>
